<compile_context>
chip_gen: v7x
topology: tpu7x:2x2x1
jax: 0.10.0
libtpu: 0.0.40
codegen_flags: <defaults>
</compile_context>

<pallas_src>
import jax
import jax.numpy as jnp
from jax.experimental import pallas as pl
from jax.experimental.pallas import tpu as pltpu


def _mish_f32(x):
    """mish(x) = x * tanh(softplus(x)), PyTorch softplus threshold=20.

    Algebraic rewrite with a single EUP transcendental:
        tanh(log1p(e)) = e*(e+2) / (e*(e+2) + 2),   e = exp(x)
    For x > 20: softplus(x) == x and tanh(x) == 1 in f32  ->  mish(x) == x.
    """
    e = jnp.exp(jnp.minimum(x, 20.0))
    t = e * (e + 2.0)
    return jnp.where(x > 20.0, x, x * (t / (t + 2.0)))


def _make_resblock_kernel(has_res_conv):
    def kernel(*refs):
        if has_res_conv:
            x_ref, w1_ref, w2_ref, wr_ref, o_ref = refs
        else:
            x_ref, w1_ref, w2_ref, o_ref = refs

        x = x_ref[...].astype(jnp.float32)                        # (Cin, TS)
        a = _mish_f32(x)                                          # Mish(x)

        w1 = w1_ref[...].astype(jnp.float32)                      # (Cmid, Cin)
        w2 = w2_ref[...].astype(jnp.float32)                      # (Cout, Cmid)
        h = jnp.dot(w1, a, preferred_element_type=jnp.float32)    # (Cmid, TS)
        y = jnp.dot(w2, h, preferred_element_type=jnp.float32)    # (Cout, TS)

        if has_res_conv:
            wr = wr_ref[...].astype(jnp.float32)                  # (Cout, Cin)
            r = jnp.dot(wr, a, preferred_element_type=jnp.float32)
        else:
            r = x                                                 # identity residual (raw x)

        o_ref[...] = _mish_f32(r + y).astype(o_ref.dtype)

    return kernel


def _pick_spatial_tile(S, c_in, c_mid, c_out,
                       vmem_budget_bytes=12 * 1024 * 1024, max_tile=16384):
    """Largest 128-multiple spatial tile fitting a conservative VMEM budget.

    Per spatial lane (f32 bytes), roughly:
      - double-buffered x block + out block : 4 * 2 * (c_in + c_out)
      - in-kernel f32 temporaries (a,h,y,r) : 4 * (c_in + c_mid + 2*c_out)
    """
    per_lane = 4 * (3 * c_in + c_mid + 4 * c_out)
    ts = (vmem_budget_bytes // per_lane // 128) * 128
    ts = max(128, min(ts, max_tile))
    return S if S <= ts else ts


def resblock3d_forward(x, w1, w2, wr=None, *, spatial_tile=None):
    """Resblock3D forward.

    x  : (N, Cin, D, H, W)
    w1 : (Cmid, Cin)   weight of block[0] 1x1x1 conv  (Cmid = Cout // 2)
    w2 : (Cout, Cmid)  weight of block[1] 1x1x1 conv
    wr : (Cout, Cin)   weight of res_conv 1x1x1 conv, or None if Cin == Cout
         (PyTorch Conv3d weights of shape (O, I, 1, 1, 1) should be squeezed
          to (O, I) before calling.)
    """
    N, c_in, D, H, W = x.shape
    c_mid, c_in_w1 = w1.shape
    c_out, c_mid_w2 = w2.shape
    assert c_in_w1 == c_in and c_mid_w2 == c_mid
    if wr is None:
        assert c_in == c_out, "identity residual requires channels == out_channels"
    else:
        assert wr.shape == (c_out, c_in)

    S = D * H * W
    xs = x.reshape(N, c_in, S)  # contiguous reshape, no HBM transpose / copy

    # Lane-dense spatial tile: multiple of 128 lanes (or full S when smaller).
    # Ragged last block is handled by Pallas masking; no padding, no post-slice.
    if spatial_tile is None:
        ts = _pick_spatial_tile(S, c_in, c_mid, c_out)
    else:
        ts = spatial_tile
    if ts >= S:
        ts = S
    else:
        ts = max(128, (ts // 128) * 128)
    grid = (N, pl.cdiv(S, ts))

    in_specs = [
        pl.BlockSpec((None, c_in, ts), lambda n, s: (n, 0, s)),
        pl.BlockSpec((c_mid, c_in), lambda n, s: (0, 0)),
        pl.BlockSpec((c_out, c_mid), lambda n, s: (0, 0)),
    ]
    args = [xs, w1, w2]
    if wr is not None:
        in_specs.append(pl.BlockSpec((c_out, c_in), lambda n, s: (0, 0)))
        args.append(wr)

    # Advisory cost estimate for XLA scheduling around the custom call.
    itemsize = jnp.dtype(x.dtype).itemsize
    flops = 2 * N * S * (c_in * c_mid + c_mid * c_out
                         + (c_in * c_out if wr is not None else 0))
    bytes_accessed = (N * S * (c_in + c_out)) * itemsize + (
        w1.size + w2.size + (wr.size if wr is not None else 0)
    ) * jnp.dtype(w1.dtype).itemsize
    transcendentals = N * S * (c_in + c_out)   # one exp per element in each Mish

    out = pl.pallas_call(
        _make_resblock_kernel(wr is not None),
        out_shape=jax.ShapeDtypeStruct((N, c_out, S), x.dtype),
        grid_spec=pltpu.PrefetchScalarGridSpec(
            num_scalar_prefetch=0,
            grid=grid,
            in_specs=in_specs,
            out_specs=pl.BlockSpec((None, c_out, ts), lambda n, s: (n, 0, s)),
        ),
        compiler_params=pltpu.CompilerParams(
            # Batch and spatial tiles are fully independent -> shard across
            # both TensorCores on v7x.
            dimension_semantics=("parallel", "parallel"),
        ),
        cost_estimate=pl.CostEstimate(
            flops=flops,
            transcendentals=transcendentals,
            bytes_accessed=bytes_accessed,
        ),
    )(*args)

    return out.reshape(N, c_out, D, H, W)


# ---------------- pure-JAX reference (matches the PyTorch module) -----------

def _mish_ref(x):
    sp = jnp.where(x > 20.0, x, jnp.log1p(jnp.exp(jnp.minimum(x, 20.0))))
    return x * jnp.tanh(sp)


def _resblock_ref(x, w1, w2, wr=None):
    hp = jax.lax.Precision.HIGHEST
    a = _mish_ref(x)
    h = jnp.einsum("oc,ncdhw->nodhw", w1, a, precision=hp)
    y = jnp.einsum("om,nmdhw->nodhw", w2, h, precision=hp)
    r = x if wr is None else jnp.einsum("oc,ncdhw->nodhw", wr, a, precision=hp)
    return _mish_ref(r + y)


if __name__ == "__main__":
    key = jax.random.PRNGKey(0)
    ks = jax.random.split(key, 10)

    N, D, H, W = 2, 4, 8, 8  # S = 256 voxels per batch element

    # --- Config A: channels == out_channels (identity residual path). -------
    cA = 16
    xA = jax.random.normal(ks[0], (N, cA, D, H, W), jnp.float32) * 2.0
    w1A = jax.random.normal(ks[1], (cA // 2, cA), jnp.float32) / jnp.sqrt(cA * 1.0)
    w2A = jax.random.normal(ks[2], (cA, cA // 2), jnp.float32) / jnp.sqrt(cA / 2.0)
    outA = resblock3d_forward(xA, w1A, w2A)
    jax.block_until_ready(outA)
    refA = _resblock_ref(xA, w1A, w2A)
    assert outA.shape == refA.shape and outA.dtype == xA.dtype
    assert jnp.allclose(outA, refA, atol=2e-3, rtol=2e-3)

    # --- Config B: channels != out_channels (1x1x1 res_conv path). ----------
    cB_in, cB_out = 8, 16
    xB = jax.random.normal(ks[3], (N, cB_in, D, H, W), jnp.float32) * 2.0
    w1B = jax.random.normal(ks[4], (cB_out // 2, cB_in), jnp.float32) / jnp.sqrt(cB_in * 1.0)
    w2B = jax.random.normal(ks[5], (cB_out, cB_out // 2), jnp.float32) / jnp.sqrt(cB_out / 2.0)
    wrB = jax.random.normal(ks[6], (cB_out, cB_in), jnp.float32) / jnp.sqrt(cB_in * 1.0)
    outB = resblock3d_forward(xB, w1B, w2B, wrB)
    jax.block_until_ready(outB)
    refB = _resblock_ref(xB, w1B, w2B, wrB)
    assert outB.shape == refB.shape and outB.dtype == xB.dtype
    assert jnp.allclose(outB, refB, atol=2e-3, rtol=2e-3)

    # --- Config C: forced small tile -> multiple spatial blocks + ragged tail.
    cC = 16
    Dc, Hc, Wc = 3, 8, 10  # S = 240, tile 128 -> 2 blocks, last one ragged
    xC = jax.random.normal(ks[7], (N, cC, Dc, Hc, Wc), jnp.float32) * 2.0
    w1C = jax.random.normal(ks[8], (cC // 2, cC), jnp.float32) / jnp.sqrt(cC * 1.0)
    w2C = jax.random.normal(ks[9], (cC, cC // 2), jnp.float32) / jnp.sqrt(cC / 2.0)
    outC = resblock3d_forward(xC, w1C, w2C, spatial_tile=128)
    jax.block_until_ready(outC)
    refC = _resblock_ref(xC, w1C, w2C)
    assert outC.shape == refC.shape and outC.dtype == xC.dtype
    assert jnp.allclose(outC, refC, atol=2e-3, rtol=2e-3)

    print("KERNEL_OK")
</pallas_src>

<mosaic_0001>
module attributes {stable_mosaic.version = 11 : i64} {
  func.func @kernel(%arg0: i32, %arg1: i32, %arg2: memref<1x16x256xf32, #tpu.memory_space<vmem>>, %arg3: memref<8x16xf32, #tpu.memory_space<vmem>>, %arg4: memref<16x8xf32, #tpu.memory_space<vmem>>, %arg5: memref<1x16x256xf32, #tpu.memory_space<vmem>>) attributes {dimension_semantics = [#tpu.dimension_semantics<parallel>, #tpu.dimension_semantics<parallel>], iteration_bounds = array<i64: 2, 1>, scalar_prefetch = 0 : i64, scratch_operands = 0 : i64, tpu.core_type = #tpu.core_type<tc>, window_params = [{transform_indices = @transform_0, window_bounds = array<i64: 1, 16, 256>}, {pipeline_mode = #tpu.pipeline_mode<synchronous>, transform_indices = @transform_1, window_bounds = array<i64: 8, 16>}, {pipeline_mode = #tpu.pipeline_mode<synchronous>, transform_indices = @transform_2, window_bounds = array<i64: 16, 8>}, {transform_indices = @transform_3, window_bounds = array<i64: 1, 16, 256>}]} {
    %c0 = arith.constant 0 : index
    %c0_0 = arith.constant 0 : index
    %c0_1 = arith.constant 0 : index
    %0 = vector.load %arg2[%c0, %c0_0, %c0_1] : memref<1x16x256xf32, #tpu.memory_space<vmem>>, vector<1x16x256xf32>
    %1 = vector.shape_cast %0 : vector<1x16x256xf32> to vector<16x256xf32>
    %cst = arith.constant 2.000000e+01 : f32
    %2 = vector.broadcast %cst : f32 to vector<16x256xf32>
    %3 = arith.minimumf %1, %2 : vector<16x256xf32>
    %4 = math.exp %3 : vector<16x256xf32>
    %cst_2 = arith.constant 2.000000e+00 : f32
    %5 = vector.broadcast %cst_2 : f32 to vector<16x256xf32>
    %6 = arith.addf %4, %5 : vector<16x256xf32>
    %7 = arith.mulf %4, %6 : vector<16x256xf32>
    %cst_3 = arith.constant 2.000000e+01 : f32
    %8 = vector.broadcast %cst_3 : f32 to vector<16x256xf32>
    %9 = arith.cmpf ogt, %1, %8 : vector<16x256xf32>
    %cst_4 = arith.constant 2.000000e+00 : f32
    %10 = vector.broadcast %cst_4 : f32 to vector<16x256xf32>
    %11 = arith.addf %7, %10 : vector<16x256xf32>
    %12 = arith.divf %7, %11 : vector<16x256xf32>
    %13 = arith.mulf %1, %12 : vector<16x256xf32>
    %14 = arith.select %9, %1, %13 : vector<16x256xi1>, vector<16x256xf32>
    %c0_5 = arith.constant 0 : index
    %c0_6 = arith.constant 0 : index
    %15 = vector.load %arg3[%c0_5, %c0_6] : memref<8x16xf32, #tpu.memory_space<vmem>>, vector<8x16xf32>
    %c0_7 = arith.constant 0 : index
    %c0_8 = arith.constant 0 : index
    %16 = vector.load %arg4[%c0_7, %c0_8] : memref<16x8xf32, #tpu.memory_space<vmem>>, vector<16x8xf32>
    %cst_9 = arith.constant dense<0.000000e+00> : vector<8x256xf32>
    %17 = tpu.matmul %15, %14, %cst_9 {dimension_numbers = #tpu.dot_dimension_numbers<[1], [0], [0], [1], [0, 0, 1, 1], [], []>} : vector<8x16xf32>, vector<16x256xf32>, vector<8x256xf32> -> vector<8x256xf32>
    %cst_10 = arith.constant dense<0.000000e+00> : vector<16x256xf32>
    %18 = tpu.matmul %16, %17, %cst_10 {dimension_numbers = #tpu.dot_dimension_numbers<[1], [0], [0], [1], [0, 0, 1, 1], [], []>} : vector<16x8xf32>, vector<8x256xf32>, vector<16x256xf32> -> vector<16x256xf32>
    %19 = arith.addf %1, %18 : vector<16x256xf32>
    %cst_11 = arith.constant 2.000000e+01 : f32
    %20 = vector.broadcast %cst_11 : f32 to vector<16x256xf32>
    %21 = arith.minimumf %19, %20 : vector<16x256xf32>
    %22 = math.exp %21 : vector<16x256xf32>
    %cst_12 = arith.constant 2.000000e+00 : f32
    %23 = vector.broadcast %cst_12 : f32 to vector<16x256xf32>
    %24 = arith.addf %22, %23 : vector<16x256xf32>
    %25 = arith.mulf %22, %24 : vector<16x256xf32>
    %cst_13 = arith.constant 2.000000e+01 : f32
    %26 = vector.broadcast %cst_13 : f32 to vector<16x256xf32>
    %27 = arith.cmpf ogt, %19, %26 : vector<16x256xf32>
    %cst_14 = arith.constant 2.000000e+00 : f32
    %28 = vector.broadcast %cst_14 : f32 to vector<16x256xf32>
    %29 = arith.addf %25, %28 : vector<16x256xf32>
    %30 = arith.divf %25, %29 : vector<16x256xf32>
    %31 = arith.mulf %19, %30 : vector<16x256xf32>
    %32 = arith.select %27, %19, %31 : vector<16x256xi1>, vector<16x256xf32>
    %c0_15 = arith.constant 0 : index
    %c0_16 = arith.constant 0 : index
    %c0_17 = arith.constant 0 : index
    %33 = vector.load %arg5[%c0_15, %c0_16, %c0_17] : memref<1x16x256xf32, #tpu.memory_space<vmem>>, vector<1x16x256xf32>
    %34 = vector.shape_cast %33 : vector<1x16x256xf32> to vector<16x256xf32>
    %35 = vector.shape_cast %32 : vector<16x256xf32> to vector<1x16x256xf32>
    tpu.vector_store %arg5[%c0_15, %c0_16, %c0_17], %35 {strides = array<i32>} : memref<1x16x256xf32, #tpu.memory_space<vmem>>, vector<1x16x256xf32>,
    return
  }
  func.func @transform_0(%arg0: i32, %arg1: i32) -> (i32, i32, i32) {
    %c0_i32 = arith.constant 0 : i32
    %c0_i32_0 = arith.constant 0 : i32
    return %arg0, %c0_i32, %arg1 : i32, i32, i32
  }
  func.func @transform_1(%arg0: i32, %arg1: i32) -> (i32, i32) {
    %c0_i32 = arith.constant 0 : i32
    %c0_i32_0 = arith.constant 0 : i32
    %c0_i32_1 = arith.constant 0 : i32
    return %c0_i32, %c0_i32_0 : i32, i32
  }
  func.func @transform_2(%arg0: i32, %arg1: i32) -> (i32, i32) {
    %c0_i32 = arith.constant 0 : i32
    %c0_i32_0 = arith.constant 0 : i32
    %c0_i32_1 = arith.constant 0 : i32
    return %c0_i32, %c0_i32_0 : i32, i32
  }
  func.func @transform_3(%arg0: i32, %arg1: i32) -> (i32, i32, i32) {
    %c0_i32 = arith.constant 0 : i32
    %c0_i32_0 = arith.constant 0 : i32
    return %arg0, %c0_i32, %arg1 : i32, i32, i32
  }
}

</mosaic_0001>

<bundles_post_ra>
// kernel: tpu_custom_call.1
= control target key start
LH: loop header
LB: loop body
LE: loop exit
PB: predicated region body
PF: predicated region fallthrough
CT: control target
= control target key end

     0   :  { %8 = vsyncpa [#allocation3], 0  ;;  %s1057_s0 = inlined_call_operand.hbm [shape: f32[2,16,256], index: 0, kind: input, shape index: {}]   ;;  %s1058_s1 = inlined_call_operand.vmem [shape: f32[8,16], index: 1, kind: input, shape index: {}]   ;;  %s1059_s2 = inlined_call_operand.vmem [shape: f32[16,8], index: 2, kind: input, shape index: {}]   ;;  %s1060_s3 = inlined_call_operand.hbm [shape: f32[2,16,256], index: 3, kind: output, shape index: {}]  }
   0x1   :  { %10 = vsyncpa [#allocation3 + $0x1], 0 }
   0x2   :  { %11 = vsyncpa [#allocation4], 0 }
   0x3   :  { %13 = vsyncpa [#allocation4 + $0x1], 0  ;;  %s838_s12 = smov 0   ;;  %s840_s13 = smov 0  }
   0x4   :  { %s842_s14 = smov 0   ;;  %s844_s15 = smov 0  }
   0x5   :  { %s846_s16 = smov 0   ;;  %s848_s17 = smov 0  }
   0x6 LB: > { %s574_s18 = sadd.s32 4294967295, %s809_s17   ;;  %s575_s19 = sadd.s32 4294967294, %s809_s17   ;;  %s809_s17 = sphi %s848_s17, %s19_s17   ;;  %s805_s16 = sphi %s846_s16, %s1075_s16   ;;  %s801_s15 = sphi %s844_s15, %s1074_s15   ;;  %s797_s14 = sphi %s842_s14, %s1073_s14   ;;  %s793_s13 = sphi %s840_s13, %s1072_s13   ;;  %s789_s12 = sphi %s838_s12, %s1071_s12  }
   0x7   : > { %s31_s20 = sadd.s32 1, %s805_s16  ;;  %s40_s21 = sadd.s32 1, %s797_s14 }
   0x8   : > { %p33_p0 = scmp.ge.s32.totalorder %s31_s20, 2  ;;  %p47_p1 = scmp.ne.s32.totalorder %s797_s14, %s793_s13 }
   0x9   : > { %p48_p2 = scmp.eq.s32.totalorder %s809_s17, 0  ;;  %p53_p3 = scmp.ne.s32.totalorder %s793_s13, %s789_s12 }
   0xa   : > { %s1077_s20 = smov (%p33_p0, %s31_s20), 0  ;;  %p54_p5 = scmp.eq.s32.totalorder %s574_s18, 0 }
   0xb   : > { %p879_p4 = por %p48_p2, %p47_p1  ;;  %s35_s23 = ssub.s32 %s805_s16, %s1077_s20 }
   0xc   : > { %p121_p6 = scmp.eq.s32.totalorder %s574_s18, 1  ;;  %p38_p7 = scmp.eq.s32.totalorder %s35_s23, 0 }
   0xd   : > { %p885_p8 = por %p54_p5, %p53_p3  ;;  %p127_p10 = scmp.eq.s32.totalorder %s575_s19, 1 }
   0xe   : > { %p889_p9 = por %p121_p6, %p47_p1  ;;  %p610_p13 = scmp.lt.s32.totalorder %s809_s17, 2 }
   0xf   : > { %s894_s26 = scalar_select %p38_p7, %s797_s14, %s40_s21  }
  0x10   : > { %s1064_s25 = scalar_select %p889_p9, 1, 0 }
  0x11   : > { %p896_p11 = por %p127_p10, %p53_p3  ;;  %s153_s28 = sand.u32 1, %s797_s14  }
  0x12   : > { %s578_s29 = sshll.u32 %s153_s28, 5  ;;  %s592_s30 = sshll.u32 %s805_s16, 9 }
  0x13   : > { %s1065_s27 = scalar_select %p896_p11, 1, 0 }
  0x14   : > { %s907_s6 = scalar_lea.hbm %s1057_s0, %s592_s30  ;;  %s157_s7 = scalar_lea.vmem [#allocation2], %s578_s29 }
  0x15   : > { %s166_s8 = sshll.u32 %s157_s7, 4  ;;  %p913_p0 = pnand %p610_p13, %p879_p4  ;;  %s909_s8 = int_to_ptr.vmem [resolvable:$true] %s166_s8 }
  0x16   : > { %s918_s10 = scalar_lea.sflag [#allocation3], %s153_s28  ;;  %s697_s11 = scalar_lea.hbm %s907_s6, 512 }
  0x17   : > { %p698_p2 = scmp.ne.s32.totalorder %s907_s6, %s697_s11  ;;  %p699_p3 = pneg %p913_p0 }
  0x18   : > { %s702_s21 = scalar_lea.hbm %s1057_s0, 1024  ;;  %p703_p4 = scmp.lt.u32.totalorder %s907_s6, %s1057_s0 }
  0x19   : > { %p700_p5 = pnand %p699_p3, %p698_p2  ;;  %p704_p7 = scmp.lt.u32.totalorder %s702_s21, %s697_s11 }
  0x1a   : > { %p706_p13 = scmp.lt.u32.totalorder %s697_s11, %s907_s6 }
  0x1b   : > { %p701_p6 = pneg %p700_p5  ;;  %p705_p10 = por %p704_p7, %p703_p4 }
  0x1d   : > { %p707_p12 = por %p706_p13, %p705_p10 }
  0x1f   : > { %p708_p1 = pnand %p707_p12, %p701_p6 }
  0x21   : > { %711 = shalt.err (!%p708_p1)
}
  0x22   : > { %s712_s28 = scalar_lea.vmem %s909_s8, 512  ;;  %s811_s29 = smov [#allocation2]  }
  0x23   : > { %p713_p2 = scmp.ne.s32.totalorder %s909_s8, %s712_s28  ;;  %s717_s30 = sshll.u32 %s811_s29, 4  ;;  %s718_s30 = int_to_ptr.vmem [resolvable:$false] %s717_s30 }
  0x24   : > { %s719_s4 = scalar_lea.vmem %s718_s30, 1024  ;;  %p720_p9 = scmp.lt.s32.totalorder %s909_s8, %s718_s30 }
  0x25   : > { %p715_p5 = pnand %p713_p2, %p699_p3  ;;  %p721_p4 = scmp.lt.s32.totalorder %s719_s4, %s712_s28 }
  0x27   : > { %p716_p11 = pneg %p715_p5  ;;  %p722_p7 = por %p721_p4, %p720_p9 }
  0x29   : > { %p723_p10 = pnand %p722_p7, %p716_p11 }
  0x2b   : > { %726 = shalt.err (!%p723_p10)
}
  0x2c   : > { %s812_s5 = smov 256   ;;  %s813_s7 = smov 16  }
  0x2d   : > { %605 = dma.hbm_to_vmem [thread:$0]  (!%p913_p0), %s907_s6, 512, %s909_s8, %s918_s10, %s812_s5, %s812_s5, %s813_s7  }
  0x2e   : > { %p174_p12 = scmp.lt.s32.totalorder %s809_s17, 3  ;;  %p1067_p1 = scmp.ge.s32.totalorder %s809_s17, 1 }
  0x30   : > { %p175_p3 = pnand %p1067_p1, %p174_p12 }
  0x31   : > { %s950_s11 = sand.u32 (!%p175_p3), 1, %s793_s13  }
  0x32   : > { %178 = sbr.rel (%p175_p3) target bundleno = 590 (0x24e), region = 32  ;;  %s582_s18 = sshll.u32 (!%p175_p3), %s950_s11, 5 }
  0x33   : > { %s181_s19 = scalar_lea.sflag (!%p175_p3), [#allocation3], %s950_s11  ;;  %s184_s21 = scalar_lea.vmem (!%p175_p3), [#allocation2], %s582_s18 }
  0x39   : > { %780 = dma.done.wait (%p885_p8), %s181_s19, 512  }
  0x3a   : > { %782 = vsyncadd (%p885_p8), %s181_s19, 4294966784  ;;  %v814_v0 = vmov 0.0   ;;  %v962_v1 = vld [vmem:[%s184_s21 + $0x8] sm:$0xff]  ;;  %v964_v2 = vld [vmem:[%s184_s21 + $0x18] sm:$0xff]  ;;  %vm260_vm4 = vcmask 130048   ;;  %vm335_vm5 = vcmask 64512  }
  0x3b   : > { %328 = vmatprep.mubr.f32.mxu0 %v814_v0  ;;  %406 = vmatprep.mubr.f32.mxu1 %v814_v0  ;;  %v966_v3 = vld [vmem:[%s184_s21] sm:$0xff]  ;;  %v214_v4 = vmin.f32 %v962_v1, 20.0  ;;  %v216_v5 = vmin.f32 %v964_v2, 20.0  ;;  %v970_v6 = vld [vmem:[%s184_s21 + $0x10] sm:$0xff]  ;;  %vm234_vm0 = vcmp.gt.f32.partialorder %v962_v1, 20.0  ;;  %vm236_vm1 = vcmp.gt.f32.partialorder %v964_v2, 20.0 }
  0x3c   : > { %v213_v7 = vmin.f32 %v966_v3, 20.0  ;;  %v215_v8 = vmin.f32 %v970_v6, 20.0  ;;  %vm233_vm2 = vcmp.gt.f32.partialorder %v966_v3, 20.0  ;;  %vm235_vm3 = vcmp.gt.f32.partialorder %v970_v6, 20.0  ;;  %v257_v47 = vld [vmem:[%s1058_s1] sm:$0xff]  ;;  %v259_v51 = vld [vmem:[%s1059_s2 + $0x8] sm:$0xff] }
  0x3d   : > { %v219_v9 = vmul.f32 1.442695, %v214_v4  ;;  %v223_v10 = vmul.f32 1.442695, %v216_v5  ;;  %v258_v50 = vld [vmem:[%s1059_s2] sm:$0xff]  ;;  %s206_s23 = scalar_lea.vmem [#allocation5], %s582_s18 }
  0x3e   : > { %v217_v11 = vmul.f32 1.442695, %v213_v7  ;;  %v221_v12 = vmul.f32 1.442695, %v215_v8  ;;  %s487_s28 = sshll.u32 %s206_s23, 4  ;;  %s593_s29 = sshll.u32 %s801_s15, 9  ;;  %s1003_s28 = int_to_ptr.vmem [resolvable:$true] %s487_s28 }
  0x3f   : > { %665 = vpow2.f32 %v219_v9  ;;  %s1008_s5 = scalar_lea.hbm %s1060_s3, %s593_s29  ;;  %s472_s15 = scalar_lea.sflag [#allocation4], %s950_s11 }
  0x40   : > { %667 = vpow2.f32 %v223_v10  ;;  %s727_s7 = scalar_lea.vmem %s1003_s28, 512  ;;  %p1068_p9 = scmp.ne.s32.totalorder %s1064_s25, 0 }
  0x41   : > { %669 = vpow2.f32 %v217_v11  ;;  %p728_p8 = scmp.ne.s32.totalorder %s1003_s28, %s727_s7  ;;  %s815_s18 = smov [#allocation5]  }
  0x42   : > { %671 = vpow2.f32 %v221_v12  ;;  %s731_s19 = sshll.u32 %s815_s18, 4  ;;  %s732_s19 = int_to_ptr.vmem [resolvable:$false] %s731_s19 }
  0x43   : > { %p729_p11 = pnand %p728_p8, %p1068_p9  ;;  %s733_s21 = scalar_lea.vmem %s732_s19, 1024 }
  0x44   : > { %p734_p6 = scmp.lt.s32.totalorder %s1003_s28, %s732_s19  ;;  %p735_p13 = scmp.lt.s32.totalorder %s733_s21, %s727_s7 }
  0x45   : > { %p730_p0 = pneg %p729_p11 }
  0x46   : > { %p736_p2 = por %p735_p13, %p734_p6 }
  0x48   : > { %p737_p5 = pnand %p736_p2, %p730_p0 }
  0x49   : > { %v666_v13 = vpop.eup %665 }
  0x4a   : > { %v668_v14 = vpop.eup %667  ;;  %v226_v15 = vadd.f32 2.0, %v666_v13 }
  0x4b   : > { %v670_v16 = vpop.eup %669  ;;  %v228_v17 = vadd.f32 2.0, %v668_v14 }
  0x4c   : > { %v672_v18 = vpop.eup %671  ;;  %v230_v19 = vmul.f32 %v666_v13, %v226_v15  ;;  %v225_v20 = vadd.f32 2.0, %v670_v16 }
  0x4d   : > { %v232_v21 = vmul.f32 %v668_v14, %v228_v17  ;;  %v227_v22 = vadd.f32 2.0, %v672_v18 }
  0x4e   : > { %v238_v23 = vadd.f32 2.0, %v230_v19  ;;  %v229_v24 = vmul.f32 %v670_v16, %v225_v20 }
  0x4f   : > { %v240_v25 = vadd.f32 2.0, %v232_v21  ;;  %v231_v26 = vmul.f32 %v672_v18, %v227_v22 }
  0x50   : > { %673 = vrcp.f32 %v238_v23  ;;  %v237_v27 = vadd.f32 2.0, %v229_v24 }
  0x51   : > { %675 = vrcp.f32 %v240_v25  ;;  %v239_v28 = vadd.f32 2.0, %v231_v26 }
  0x52   : > { %677 = vrcp.f32 %v237_v27 }
  0x53   : > { %679 = vrcp.f32 %v239_v28 }
  0x5a   : > { %v674_v29 = vpop.eup %673 }
  0x5b   : > { %v676_v30 = vpop.eup %675  ;;  %v244_v31 = vmul.f32 %v674_v29, %v230_v19 }
  0x5c   : > { %v678_v32 = vpop.eup %677  ;;  %v248_v33 = vmul.f32 %v676_v30, %v232_v21 }
  0x5d   : > { %v680_v34 = vpop.eup %679  ;;  %v250_v35 = vmul.f32 %v244_v31, %v962_v1  ;;  %v242_v36 = vmul.f32 %v678_v32, %v229_v24 }
  0x5e   : > { %v252_v37 = vmul.f32 %v248_v33, %v964_v2  ;;  %v246_v38 = vmul.f32 %v680_v34, %v231_v26 }
  0x5f   : > { %v254_v39 = vsel %vm234_vm0, %v962_v1, %v250_v35  ;;  %v249_v40 = vmul.f32 %v242_v36, %v966_v3 }
  0x60   : > { %v256_v41 = vsel %vm236_vm1, %v964_v2, %v252_v37  ;;  %v251_v42 = vmul.f32 %v246_v38, %v970_v6 }
  0x61   : > { %v594_v43 = vpack.c.bf16 %v256_v41, %v254_v39  ;;  %v253_v44 = vsel %vm233_vm2, %v966_v3, %v249_v40 }
  0x62   : > { %v255_v45 = vsel %vm235_vm3, %v970_v6, %v251_v42 }
  0x63   : > { %595 = vmatprep.subr.bf16.mxu0 %v594_v43  ;;  %v596_v46 = vpack.c.bf16 %v255_v45, %v253_v44 }
  0x65   : > { %597 = vmatpush1.bf16.msra.mxu0 %v596_v46 }
  0x68   : > { %584 = vmatmul.mubr.msk.f32.vlgmr.msra.gmra.mrb[0].mxu0 %vm260_vm4, %v257_v47 }
 0x13b   : > { %v330_v48 = vpop.f32.mrb[0].mxu0 }
 0x13c   : > { %v332_v49 = vpop.f32.mrb[1].mxu0 }
 0x13d   : > { %342 = vmatprep.subr.mxu1 %v332_v49 }
 0x13e   : > { %343 = vmatpush1.msra.mxu1 %v330_v48 }
 0x13f   : > { %585 = vmatmul.mubr.msk.f32.vlgmr.msra.gmra.mrb[0].mxu1 %vm335_vm5, %v258_v50 }
 0x140   : > { %412 = vmatprep.mubr.f32.mxu1 %v814_v0 }
 0x143   : > { %586 = vmatmul.mubr.msk.f32.gmra.mrb[2].mxu1 %vm335_vm5, %v259_v51 }
 0x212   : > { %v408_v52 = vpop.f32.mrb[0].mxu1 }
 0x213   : > { %v419_v53 = vadd.f32 %v408_v52, %v966_v3  ;;  %v410_v54 = vpop.f32.mrb[1].mxu1 }
 0x214   : > { %v420_v55 = vadd.f32 %v410_v54, %v962_v1 }
 0x215   : > { %v423_v56 = vmin.f32 %v419_v53, 20.0  ;;  %vm443_vm6 = vcmp.gt.f32.partialorder %v419_v53, 20.0 }
 0x216   : > { %v424_v57 = vmin.f32 %v420_v55, 20.0  ;;  %v414_v58 = vpop.f32.mrb[2].mxu1  ;;  %vm444_vm7 = vcmp.gt.f32.partialorder %v420_v55, 20.0 }
 0x217   : > { %v427_v59 = vmul.f32 1.442695, %v423_v56  ;;  %v421_v60 = vadd.f32 %v414_v58, %v970_v6  ;;  %v416_v61 = vpop.f32.mrb[3].mxu1 }
 0x218   : > { %v429_v62 = vmul.f32 1.442695, %v424_v57  ;;  %v422_v63 = vadd.f32 %v416_v61, %v964_v2 }
 0x219   : > { %681 = vpow2.f32 %v427_v59  ;;  %v425_v0 = vmin.f32 %v421_v60, 20.0  ;;  %vm445_vm8 = vcmp.gt.f32.partialorder %v421_v60, 20.0 }
 0x21a   : > { %683 = vpow2.f32 %v429_v62  ;;  %v426_v4 = vmin.f32 %v422_v63, 20.0  ;;  %vm446_vm9 = vcmp.gt.f32.partialorder %v422_v63, 20.0 }
 0x21b   : > { %v431_v5 = vmul.f32 1.442695, %v425_v0 }
 0x21c   : > { %v433_v7 = vmul.f32 1.442695, %v426_v4 }
 0x21d   : > { %685 = vpow2.f32 %v431_v5 }
 0x21e   : > { %687 = vpow2.f32 %v433_v7 }
 0x223   : > { %v682_v3 = vpop.eup %681 }
 0x224   : > { %v684_v1 = vpop.eup %683  ;;  %v435_v8 = vadd.f32 2.0, %v682_v3 }
 0x225   : > { %v436_v9 = vadd.f32 2.0, %v684_v1 }
 0x226   : > { %v439_v10 = vmul.f32 %v682_v3, %v435_v8 }
 0x227   : > { %v686_v11 = vpop.eup %685  ;;  %v440_v12 = vmul.f32 %v684_v1, %v436_v9 }
 0x228   : > { %v688_v6 = vpop.eup %687  ;;  %v447_v13 = vadd.f32 2.0, %v439_v10  ;;  %v437_v14 = vadd.f32 2.0, %v686_v11 }
 0x229   : > { %v448_v15 = vadd.f32 2.0, %v440_v12  ;;  %v438_v2 = vadd.f32 2.0, %v688_v6 }
 0x22a   : > { %689 = vrcp.f32 %v447_v13  ;;  %v441_v16 = vmul.f32 %v686_v11, %v437_v14 }
 0x22b   : > { %691 = vrcp.f32 %v448_v15  ;;  %v442_v17 = vmul.f32 %v688_v6, %v438_v2 }
 0x22c   : > { %v449_v18 = vadd.f32 2.0, %v441_v16 }
 0x22d   : > { %v450_v19 = vadd.f32 2.0, %v442_v17 }
 0x22e   : > { %693 = vrcp.f32 %v449_v18 }
 0x22f   : > { %695 = vrcp.f32 %v450_v19 }
 0x234   : > { %v690_v20 = vpop.eup %689 }
 0x235   : > { %v692_v21 = vpop.eup %691  ;;  %v452_v22 = vmul.f32 %v690_v20, %v439_v10 }
 0x236   : > { %v454_v23 = vmul.f32 %v692_v21, %v440_v12 }
 0x237   : > { %v459_v24 = vmul.f32 %v452_v22, %v419_v53 }
 0x238   : > { %v694_v25 = vpop.eup %693  ;;  %v460_v26 = vmul.f32 %v454_v23, %v420_v55 }
 0x239   : > { %v696_v27 = vpop.eup %695  ;;  %v463_v28 = vsel %vm443_vm6, %v419_v53, %v459_v24  ;;  %v456_v29 = vmul.f32 %v694_v25, %v441_v16 }
 0x23a   : > { %467 = vst [vmem:[%s206_s23] sm:$0xff] %v463_v28  ;;  %v464_v30 = vsel %vm444_vm7, %v420_v55, %v460_v26  ;;  %v458_v31 = vmul.f32 %v696_v27, %v442_v17 }
 0x23b   : > { %468 = vst [vmem:[%s206_s23 + $0x8] sm:$0xff] %v464_v30  ;;  %v461_v32 = vmul.f32 %v456_v29, %v421_v60 }
 0x23c   : > { %v462_v33 = vmul.f32 %v458_v31, %v422_v63 }
 0x23d   : > { %v465_v34 = vsel %vm445_vm8, %v421_v60, %v461_v32 }
 0x23e   : > { %469 = vst [vmem:[%s206_s23 + $0x10] sm:$0xff] %v465_v34  ;;  %v466_v35 = vsel %vm446_vm9, %v422_v63, %v462_v33 }
 0x23f   : > { %470 = vst [vmem:[%s206_s23 + $0x18] sm:$0xff] %v466_v35 }
 0x240   : > { %740 = shalt.err (!%p737_p5)
}
 0x241   : > { %s741_s24 = scalar_lea.hbm %s1008_s5, 512  ;;  %s745_s9 = scalar_lea.hbm %s1060_s3, 1024 }
 0x242   : > { %p742_p4 = scmp.ne.s32.totalorder %s1008_s5, %s741_s24  ;;  %p746_p12 = scmp.lt.u32.totalorder %s1008_s5, %s1060_s3 }
 0x243   : > { %p747_p1 = scmp.lt.u32.totalorder %s745_s9, %s741_s24  ;;  %p749_p8 = scmp.lt.u32.totalorder %s741_s24, %s1008_s5 }
 0x244   : > { %p743_p7 = pnand %p742_p4, %p1068_p9 }
 0x245   : > { %p748_p3 = por %p747_p1, %p746_p12 }
 0x246   : > { %p744_p10 = pneg %p743_p7 }
 0x247   : > { %p750_p11 = por %p749_p8, %p748_p3 }
 0x249   : > { %p751_p0 = pnand %p750_p11, %p744_p10 }
 0x24b   : > { %754 = shalt.err (!%p751_p0)
}
 0x24c   : > { %s816_s23 = smov 256   ;;  %s817_s29 = smov 16  }
 0x24d   : > { %600 = dma.vmem_to_hbm [thread:$0]  (%p1068_p9), %s1003_s28, 512, %s1008_s5, %s472_s15, %s816_s23, %s816_s23, %s817_s29  }
 0x24e PF: > { %s502_s30 = sand.u32 1, %s789_s12   ;;  %p1069_p6 = scmp.ne.s32.totalorder %s1065_s27, 0 }
 0x24f   : > { %p1070_p13 = scmp.ge.s32.totalorder %s809_s17, 2  ;;  %s503_s4 = scalar_lea.sflag [#allocation4], %s502_s30 }
 0x251   : > { %p607_p2 = pnand %p1070_p13, %p1069_p6 }
 0x253   : > { %784 = dma.done.wait (!%p607_p2), %s503_s4, 512  }
 0x254   : > { %786 = vsyncadd (!%p607_p2), %s503_s4, 4294966784  ;;  %s19_s17 = sadd.s32 1, %s809_s17   ;;  %s1071_s12 = smov %s793_s13 }
 0x255   : > { %p16_p5 = scmp.ge.s32.totalorder %s19_s17, 4   ;;  %s1072_s13 = smov %s797_s14 }
 0x256   : > { %s1073_s14 = smov %s894_s26  ;;  %s1074_s15 = smov %s805_s16 }
 0x257   : > { %s1075_s16 = smov %s1077_s20  ;;  %18 = sbr.rel (!%p16_p5) target bundleno = 6 (0x6), region = 77 }
 0x25e   :  { %508 = vsyncpa [#allocation3], 1 }
 0x25f   :  { %510 = vsyncpa [#allocation3 + $0x1], 1 }
 0x260   :  { %511 = vsyncpa [#allocation4], 1 }
 0x261   :  { %513 = vsyncpa [#allocation4 + $0x1], 1 }

</bundles_post_ra>
